<compile_context>
chip_gen: v7x
topology: tpu7x:2x2x1
jax: 0.10.0
libtpu: 0.0.40
codegen_flags: <defaults>
</compile_context>

<pallas_src>
import jax
import jax.numpy as jnp
from jax import lax
from jax.experimental import pallas as pl
from jax.experimental.pallas import tpu as pltpu

_EPS = 1e-5   # torch.nn.LayerNorm default
SLAB = 8      # sublane-aligned row window around the flagged class token


def _gelu(x):
    # exact GELU (torch.nn.GELU default, erf-based); compute is 8 rows, keep
    # the faithful form rather than the tanh approximation.
    return 0.5 * x * (1.0 + lax.erf(x / jnp.sqrt(2.0).astype(x.dtype)))


def _layernorm(x, g, b):
    # two-pass variance (E[(x-mu)^2]) — matches torch numerics; at 8 rows the
    # extra traversal is free and removes the one-pass precision concern.
    mu = jnp.mean(x, axis=-1, keepdims=True)
    var = jnp.mean(jnp.square(x - mu), axis=-1, keepdims=True)
    return (x - mu) * lax.rsqrt(var + _EPS) * g + b


def _mxu_dot(a_f32, w):
    # Cast the fp32 activation to the (bf16) weight dtype right at the dot so
    # the MXU runs its native bf16 x bf16 -> f32 path; everything around the
    # dots (LN stats, residuals, scatter) stays fp32.
    return jnp.dot(a_f32.astype(w.dtype), w, preferred_element_type=jnp.float32)


def _fuse_kernel(blk_ref, row_ref,                  # scalar prefetch (SMEM)
                 text_ref, id_ref,                  # (1,SLAB,D) window, (1,1,D) id
                 ln1_g, ln1_b,                      # MLP1 LayerNorm over concat (1, 2D)
                 w11, b11, w12, b12,                # MLP1 fc1 (2D,D bf16), fc2 (D,D bf16)
                 ln2_g, ln2_b, w21, b21, w22, b22,  # MLP2
                 lnf_g, lnf_b,                      # final LayerNorm
                 out_ref):
    del blk_ref  # only consumed by the index_maps
    b = pl.program_id(0)
    row = row_ref[b]          # class-token row inside the slab; -1 => no flagged token

    x = text_ref[0]           # (SLAB, D) prompt-embed window, fp32
    idv = id_ref[0]           # (1, D) id embedding, fp32
    D = x.shape[-1]

    # ---- MLP1: LayerNorm over the *virtual* concat [x | id] (no (S,2D) buffer) ----
    inv_2d = 1.0 / float(2 * D)
    mu = (jnp.sum(x, axis=-1, keepdims=True)
          + jnp.sum(idv, axis=-1, keepdims=True)) * inv_2d              # (SLAB,1)
    dx = x - mu                                                          # (SLAB,D)
    di = idv - mu                                                        # (SLAB,D) broadcast
    var = (jnp.sum(dx * dx, axis=-1, keepdims=True)
           + jnp.sum(di * di, axis=-1, keepdims=True)) * inv_2d
    rstd = lax.rsqrt(var + _EPS)

    # ln1 / w11 are stored whole (concat layout); static Ref views are free,
    # so no per-call host-side slicing (saves a full read+write of w11 in HBM).
    nx = dx * rstd * ln1_g[:, :D] + ln1_b[:, :D]        # (SLAB, D) fp32
    nid = di * rstd * ln1_g[:, D:] + ln1_b[:, D:]       # (SLAB, D) fp32
    h = _mxu_dot(nx, w11[:D, :]) + _mxu_dot(nid, w11[D:, :]) + b11[...]
    h = _gelu(h)
    h = _mxu_dot(h, w12[...]) + b12[...]
    h = h + x                                            # + prompt embeds (fp32)

    # ---- MLP2: LN -> fc1 -> GELU -> fc2 + residual ----
    r = h
    h = _layernorm(h, ln2_g[...], ln2_b[...])
    h = _mxu_dot(h, w21[...]) + b21[...]
    h = _gelu(h)
    h = _mxu_dot(h, w22[...]) + b22[...]
    h = h + r
    fused = _layernorm(h, lnf_g[...], lnf_b[...])

    # masked_scatter_: only the flagged class-token row of the slab is replaced;
    # every other row is written back unchanged.  row == -1 => pure pass-through.
    rows = lax.broadcasted_iota(jnp.int32, (x.shape[0], 1), 0)
    out_ref[0] = jnp.where(rows == row, fused, x).astype(out_ref.dtype)


def prepare_fuse_params(params, weight_dtype=jnp.bfloat16):
    """One-time (adapter-init) prep: cast the large weight matrices to bf16.

    LN gains/biases and linear biases stay fp32 (tiny, applied after the fp32
    accumulation).  Do NOT call this per forward — the whole point is to avoid
    re-materializing weights in HBM on every call.
    """
    (ln1_g, ln1_b, w11, b11, w12, b12,
     ln2_g, ln2_b, w21, b21, w22, b22, lnf_g, lnf_b) = params
    c = lambda w: w.astype(weight_dtype)
    return (ln1_g, ln1_b, c(w11), b11, c(w12), b12,
            ln2_g, ln2_b, c(w21), b21, c(w22), b22, lnf_g, lnf_b)


def photomaker_fuse(text_embeds, id_embeds, token_mask, kparams):
    """FuseModule forward: scatter fused(class-token, id_embed) into text_embeds.

    kparams must come from prepare_fuse_params (bf16 weight matrices).
    """
    B, S, D = text_embeds.shape

    # Host-side guard + index extraction (num_control_images == 1: at most one
    # flagged token per prompt; rows without a flag become a no-op via row=-1).
    mask2d = token_mask[..., 0] > 0.5                       # (B, S) bool
    has_tok = jnp.any(mask2d, axis=1)
    tok_idx = jnp.argmax(mask2d, axis=1).astype(jnp.int32)
    blk_idx = jnp.where(has_tok, tok_idx // SLAB, 0).astype(jnp.int32)
    row_idx = jnp.where(has_tok, tok_idx % SLAB, -1).astype(jnp.int32)

    # Grid-invariant params: constant index_map + single-buffered, so each
    # weight is DMA'd once and holds only 1x its size in VMEM (default double
    # buffering would blow past v7x's 64 MiB at production D).
    param_specs = [
        pl.BlockSpec(p.shape, lambda b, blk, row, n=p.ndim: (0,) * n,
                     pipeline_mode=pl.Buffered(1))
        for p in kparams
    ]

    grid_spec = pltpu.PrefetchScalarGridSpec(
        num_scalar_prefetch=2,
        grid=(B,),
        in_specs=[
            # 8-row window around the flagged token (partial trailing block OK)
            pl.BlockSpec((1, SLAB, D), lambda b, blk, row: (b, blk[b], 0)),
            pl.BlockSpec((1, 1, D), lambda b, blk, row: (b, 0, 0)),
        ] + param_specs,
        out_specs=pl.BlockSpec((1, SLAB, D), lambda b, blk, row: (b, blk[b], 0)),
    )

    return pl.pallas_call(
        _fuse_kernel,
        out_shape=jax.ShapeDtypeStruct((B, S, D), text_embeds.dtype),
        grid_spec=grid_spec,
        # inputs = (blk_idx, row_idx, text_embeds, id_embeds, *kparams);
        # alias text_embeds (flat input 2) to output 0 so the untouched token
        # rows are never streamed through VMEM.
        input_output_aliases={2: 0},
        compiler_params=pltpu.CompilerParams(
            # "arbitrary": sharding B<=4 over v7x's two TCs would duplicate the
            # dominant weight DMA per core for negligible compute parallelism.
            dimension_semantics=("arbitrary",),
            # bf16 + single-buffered weights need more than the default scoped
            # VMEM limit at production D; 48 MiB also respects v7x's 64 MiB.
            vmem_limit_bytes=48 * 1024 * 1024),
    )(blk_idx, row_idx, text_embeds, id_embeds, *kparams)


# ----------------------------- reference (faithful) -----------------------------
def _reference(text, id_emb, mask, params):
    (ln1_g, ln1_b, w11, b11, w12, b12,
     ln2_g, ln2_b, w21, b21, w22, b22, lnf_g, lnf_b) = params
    B, S, D = text.shape
    id_b = jnp.broadcast_to(id_emb, (B, S, D))
    cat = jnp.concatenate([text, id_b], axis=-1)
    h = _layernorm(cat, ln1_g, ln1_b)
    h = _gelu(h @ w11 + b11) @ w12 + b12
    h = h + text
    r = h
    h = _layernorm(h, ln2_g, ln2_b)
    h = _gelu(h @ w21 + b21) @ w22 + b22
    h = h + r
    fused = _layernorm(h, lnf_g, lnf_b)
    return jnp.where(mask > 0.5, fused, text)


if __name__ == "__main__":
    B, S, D = 3, 77, 128        # 77 = CLIP text tokens, D = cross_attention_dim
    key = jax.random.PRNGKey(0)
    ks = jax.random.split(key, 12)

    text = jax.random.normal(ks[0], (B, S, D), jnp.float32)
    id_emb = jax.random.normal(ks[1], (B, 1, D), jnp.float32)
    # one flagged class token per prompt; prompt 1 flags token 75 (exercises the
    # partial trailing 8-row window); prompt 2 has no flag -> must pass through.
    token_mask = (jnp.zeros((B, S, 1), jnp.float32)
                  .at[0, 5, 0].set(1.0)
                  .at[1, 75, 0].set(1.0))

    def lin_w(k, i, o):
        return 0.02 * jax.random.normal(k, (i, o), jnp.float32)

    def vec(k, n, base):
        return base + 0.01 * jax.random.normal(k, (1, n), jnp.float32)

    params = (
        vec(ks[2], 2 * D, 1.0), vec(ks[3], 2 * D, 0.0),          # MLP1 layernorm
        lin_w(ks[4], 2 * D, D), vec(ks[5], D, 0.0),              # MLP1 fc1
        lin_w(ks[6], D, D),     vec(ks[7], D, 0.0),              # MLP1 fc2
        vec(ks[8], D, 1.0),     vec(ks[9], D, 0.0),              # MLP2 layernorm
        lin_w(ks[10], D, D),    jnp.zeros((1, D), jnp.float32),  # MLP2 fc1
        lin_w(ks[11], D, D),    jnp.zeros((1, D), jnp.float32),  # MLP2 fc2
        jnp.ones((1, D), jnp.float32), jnp.zeros((1, D), jnp.float32),  # final LN
    )

    kparams = prepare_fuse_params(params)            # one-time bf16 weight cast
    out = photomaker_fuse(text, id_emb, token_mask, kparams)
    jax.block_until_ready(out)

    # Reference in fp32 with the same bf16-quantized weights; the remaining
    # kernel-vs-ref delta is only the bf16 activation cast at the MXU inputs.
    q = lambda w: w.astype(jnp.bfloat16).astype(jnp.float32)
    (ln1_g, ln1_b, w11, b11, w12, b12,
     ln2_g, ln2_b, w21, b21, w22, b22, lnf_g, lnf_b) = params
    ref_params = (ln1_g, ln1_b, q(w11), b11, q(w12), b12,
                  ln2_g, ln2_b, q(w21), b21, q(w22), b22, lnf_g, lnf_b)
    ref = _reference(text, id_emb, token_mask, ref_params)

    assert out.shape == (B, S, D)
    err = float(jnp.max(jnp.abs(out - ref)))
    assert jnp.allclose(out, ref, atol=2e-2, rtol=2e-2), f"max abs err {err}"
    # untouched rows come straight from the aliased input buffer (bit-exact)
    assert jnp.array_equal(out[2], text[2])
    assert jnp.array_equal(out[0, 6:], text[0, 6:])
    print("KERNEL_OK")
</pallas_src>

<mosaic_0001>
module attributes {stable_mosaic.version = 11 : i64} {
  func.func @_fuse_kernel(%arg0: i32, %arg1: memref<3xi32, #tpu.memory_space<smem>>, %arg2: memref<3xi32, #tpu.memory_space<smem>>, %arg3: memref<1x8x128xf32, #tpu.memory_space<vmem>>, %arg4: memref<1x1x128xf32, #tpu.memory_space<vmem>>, %arg5: memref<1x256xf32, #tpu.memory_space<vmem>>, %arg6: memref<1x256xf32, #tpu.memory_space<vmem>>, %arg7: memref<256x128xbf16, #tpu.memory_space<vmem>>, %arg8: memref<1x128xf32, #tpu.memory_space<vmem>>, %arg9: memref<128x128xbf16, #tpu.memory_space<vmem>>, %arg10: memref<1x128xf32, #tpu.memory_space<vmem>>, %arg11: memref<1x128xf32, #tpu.memory_space<vmem>>, %arg12: memref<1x128xf32, #tpu.memory_space<vmem>>, %arg13: memref<128x128xbf16, #tpu.memory_space<vmem>>, %arg14: memref<1x128xf32, #tpu.memory_space<vmem>>, %arg15: memref<128x128xbf16, #tpu.memory_space<vmem>>, %arg16: memref<1x128xf32, #tpu.memory_space<vmem>>, %arg17: memref<1x128xf32, #tpu.memory_space<vmem>>, %arg18: memref<1x128xf32, #tpu.memory_space<vmem>>, %arg19: memref<1x8x128xf32, #tpu.memory_space<vmem>>) attributes {dimension_semantics = [#tpu.dimension_semantics<arbitrary>], iteration_bounds = array<i64: 3>, scalar_prefetch = 2 : i64, scratch_operands = 0 : i64, tpu.core_type = #tpu.core_type<tc>, window_params = [{transform_indices = @transform_0, window_bounds = array<i64: 1, 8, 128>}, {transform_indices = @transform_1, window_bounds = array<i64: 1, 1, 128>}, {pipeline_mode = #tpu.pipeline_mode<synchronous>, transform_indices = @transform_2, window_bounds = array<i64: 1, 256>}, {pipeline_mode = #tpu.pipeline_mode<synchronous>, transform_indices = @transform_3, window_bounds = array<i64: 1, 256>}, {pipeline_mode = #tpu.pipeline_mode<synchronous>, transform_indices = @transform_4, window_bounds = array<i64: 256, 128>}, {pipeline_mode = #tpu.pipeline_mode<synchronous>, transform_indices = @transform_5, window_bounds = array<i64: 1, 128>}, {pipeline_mode = #tpu.pipeline_mode<synchronous>, transform_indices = @transform_6, window_bounds = array<i64: 128, 128>}, {pipeline_mode = #tpu.pipeline_mode<synchronous>, transform_indices = @transform_7, window_bounds = array<i64: 1, 128>}, {pipeline_mode = #tpu.pipeline_mode<synchronous>, transform_indices = @transform_8, window_bounds = array<i64: 1, 128>}, {pipeline_mode = #tpu.pipeline_mode<synchronous>, transform_indices = @transform_9, window_bounds = array<i64: 1, 128>}, {pipeline_mode = #tpu.pipeline_mode<synchronous>, transform_indices = @transform_10, window_bounds = array<i64: 128, 128>}, {pipeline_mode = #tpu.pipeline_mode<synchronous>, transform_indices = @transform_11, window_bounds = array<i64: 1, 128>}, {pipeline_mode = #tpu.pipeline_mode<synchronous>, transform_indices = @transform_12, window_bounds = array<i64: 128, 128>}, {pipeline_mode = #tpu.pipeline_mode<synchronous>, transform_indices = @transform_13, window_bounds = array<i64: 1, 128>}, {pipeline_mode = #tpu.pipeline_mode<synchronous>, transform_indices = @transform_14, window_bounds = array<i64: 1, 128>}, {pipeline_mode = #tpu.pipeline_mode<synchronous>, transform_indices = @transform_15, window_bounds = array<i64: 1, 128>}, {transform_indices = @transform_16, window_bounds = array<i64: 1, 8, 128>}]} {
    %0 = arith.index_cast %arg0 : i32 to index
    %1 = memref.load %arg2[%0] : memref<3xi32, #tpu.memory_space<smem>>
    %c0 = arith.constant 0 : index
    %c0_0 = arith.constant 0 : index
    %c0_1 = arith.constant 0 : index
    %2 = vector.load %arg3[%c0, %c0_0, %c0_1] : memref<1x8x128xf32, #tpu.memory_space<vmem>>, vector<1x8x128xf32>
    %3 = vector.shape_cast %2 : vector<1x8x128xf32> to vector<8x128xf32>
    %c0_2 = arith.constant 0 : index
    %c0_3 = arith.constant 0 : index
    %c0_4 = arith.constant 0 : index
    %4 = vector.load %arg4[%c0_2, %c0_3, %c0_4] : memref<1x1x128xf32, #tpu.memory_space<vmem>>, vector<1x1x128xf32>
    %5 = vector.shape_cast %4 : vector<1x1x128xf32> to vector<1x128xf32>
    %cst = arith.constant dense<0.000000e+00> : vector<8xf32>
    %6 = vector.multi_reduction <add>, %3, %cst [1] : vector<8x128xf32> to vector<8xf32>
    %7 = vector.shape_cast %6 : vector<8xf32> to vector<8x1xf32>
    %cst_5 = arith.constant dense<0.000000e+00> : vector<1xf32>
    %8 = vector.multi_reduction <add>, %5, %cst_5 [1] : vector<1x128xf32> to vector<1xf32>
    %9 = vector.shape_cast %8 : vector<1xf32> to vector<1x1xf32>
    %10 = vector.broadcast %9 : vector<1x1xf32> to vector<8x1xf32>
    %11 = arith.addf %7, %10 : vector<8x1xf32>
    %cst_6 = arith.constant 3.906250e-03 : f32
    %12 = vector.broadcast %cst_6 : f32 to vector<8x1xf32>
    %13 = arith.mulf %11, %12 : vector<8x1xf32>
    %14 = vector.broadcast %13 : vector<8x1xf32> to vector<8x128xf32>
    %15 = arith.subf %3, %14 : vector<8x128xf32>
    %16 = vector.broadcast %5 : vector<1x128xf32> to vector<8x128xf32>
    %17 = vector.broadcast %13 : vector<8x1xf32> to vector<8x128xf32>
    %18 = arith.subf %16, %17 : vector<8x128xf32>
    %19 = arith.mulf %15, %15 : vector<8x128xf32>
    %cst_7 = arith.constant dense<0.000000e+00> : vector<8xf32>
    %20 = vector.multi_reduction <add>, %19, %cst_7 [1] : vector<8x128xf32> to vector<8xf32>
    %21 = vector.shape_cast %20 : vector<8xf32> to vector<8x1xf32>
    %22 = arith.mulf %18, %18 : vector<8x128xf32>
    %cst_8 = arith.constant dense<0.000000e+00> : vector<8xf32>
    %23 = vector.multi_reduction <add>, %22, %cst_8 [1] : vector<8x128xf32> to vector<8xf32>
    %24 = vector.shape_cast %23 : vector<8xf32> to vector<8x1xf32>
    %25 = arith.addf %21, %24 : vector<8x1xf32>
    %cst_9 = arith.constant 3.906250e-03 : f32
    %26 = vector.broadcast %cst_9 : f32 to vector<8x1xf32>
    %27 = arith.mulf %25, %26 : vector<8x1xf32>
    %cst_10 = arith.constant 9.99999974E-6 : f32
    %28 = vector.broadcast %cst_10 : f32 to vector<8x1xf32>
    %29 = arith.addf %27, %28 : vector<8x1xf32>
    %30 = math.rsqrt %29 : vector<8x1xf32>
    %31 = vector.broadcast %30 : vector<8x1xf32> to vector<8x128xf32>
    %32 = arith.mulf %15, %31 : vector<8x128xf32>
    %c0_11 = arith.constant 0 : index
    %c0_12 = arith.constant 0 : index
    %33 = vector.load %arg5[%c0_11, %c0_12] : memref<1x256xf32, #tpu.memory_space<vmem>>, vector<1x128xf32>
    %34 = vector.broadcast %33 : vector<1x128xf32> to vector<8x128xf32>
    %35 = arith.mulf %32, %34 : vector<8x128xf32>
    %c0_13 = arith.constant 0 : index
    %c0_14 = arith.constant 0 : index
    %36 = vector.load %arg6[%c0_13, %c0_14] : memref<1x256xf32, #tpu.memory_space<vmem>>, vector<1x128xf32>
    %37 = vector.broadcast %36 : vector<1x128xf32> to vector<8x128xf32>
    %38 = arith.addf %35, %37 : vector<8x128xf32>
    %39 = vector.broadcast %30 : vector<8x1xf32> to vector<8x128xf32>
    %40 = arith.mulf %18, %39 : vector<8x128xf32>
    %c0_15 = arith.constant 0 : index
    %c128 = arith.constant 128 : index
    %41 = vector.load %arg5[%c0_15, %c128] : memref<1x256xf32, #tpu.memory_space<vmem>>, vector<1x128xf32>
    %42 = vector.broadcast %41 : vector<1x128xf32> to vector<8x128xf32>
    %43 = arith.mulf %40, %42 : vector<8x128xf32>
    %c0_16 = arith.constant 0 : index
    %c128_17 = arith.constant 128 : index
    %44 = vector.load %arg6[%c0_16, %c128_17] : memref<1x256xf32, #tpu.memory_space<vmem>>, vector<1x128xf32>
    %45 = vector.broadcast %44 : vector<1x128xf32> to vector<8x128xf32>
    %46 = arith.addf %43, %45 : vector<8x128xf32>
    %c0_18 = arith.constant 0 : index
    %c0_19 = arith.constant 0 : index
    %47 = vector.load %arg7[%c0_18, %c0_19] : memref<256x128xbf16, #tpu.memory_space<vmem>>, vector<128x128xbf16>
    %48 = arith.truncf %38 : vector<8x128xf32> to vector<8x128xbf16>
    %cst_20 = arith.constant dense<0.000000e+00> : vector<8x128xf32>
    %49 = tpu.matmul %48, %47, %cst_20 {dimension_numbers = #tpu.dot_dimension_numbers<[1], [0], [0], [1], [0, 0, 1, 1], [], []>} : vector<8x128xbf16>, vector<128x128xbf16>, vector<8x128xf32> -> vector<8x128xf32>
    %c128_21 = arith.constant 128 : index
    %c0_22 = arith.constant 0 : index
    %50 = vector.load %arg7[%c128_21, %c0_22] : memref<256x128xbf16, #tpu.memory_space<vmem>>, vector<128x128xbf16>
    %51 = arith.truncf %46 : vector<8x128xf32> to vector<8x128xbf16>
    %cst_23 = arith.constant dense<0.000000e+00> : vector<8x128xf32>
    %52 = tpu.matmul %51, %50, %cst_23 {dimension_numbers = #tpu.dot_dimension_numbers<[1], [0], [0], [1], [0, 0, 1, 1], [], []>} : vector<8x128xbf16>, vector<128x128xbf16>, vector<8x128xf32> -> vector<8x128xf32>
    %53 = arith.addf %49, %52 : vector<8x128xf32>
    %c0_24 = arith.constant 0 : index
    %c0_25 = arith.constant 0 : index
    %54 = vector.load %arg8[%c0_24, %c0_25] : memref<1x128xf32, #tpu.memory_space<vmem>>, vector<1x128xf32>
    %55 = vector.broadcast %54 : vector<1x128xf32> to vector<8x128xf32>
    %56 = arith.addf %53, %55 : vector<8x128xf32>
    %cst_26 = arith.constant 5.000000e-01 : f32
    %57 = vector.broadcast %cst_26 : f32 to vector<8x128xf32>
    %58 = arith.mulf %57, %56 : vector<8x128xf32>
    %cst_27 = arith.constant 2.000000e+00 : f32
    %59 = math.sqrt %cst_27 : f32
    %60 = vector.broadcast %59 : f32 to vector<8x128xf32>
    %61 = arith.divf %56, %60 : vector<8x128xf32>
    %62 = math.erf %61 : vector<8x128xf32>
    %cst_28 = arith.constant 1.000000e+00 : f32
    %63 = vector.broadcast %cst_28 : f32 to vector<8x128xf32>
    %64 = arith.addf %63, %62 : vector<8x128xf32>
    %65 = arith.mulf %58, %64 : vector<8x128xf32>
    %c0_29 = arith.constant 0 : index
    %c0_30 = arith.constant 0 : index
    %66 = vector.load %arg9[%c0_29, %c0_30] : memref<128x128xbf16, #tpu.memory_space<vmem>>, vector<128x128xbf16>
    %67 = arith.truncf %65 : vector<8x128xf32> to vector<8x128xbf16>
    %cst_31 = arith.constant dense<0.000000e+00> : vector<8x128xf32>
    %68 = tpu.matmul %67, %66, %cst_31 {dimension_numbers = #tpu.dot_dimension_numbers<[1], [0], [0], [1], [0, 0, 1, 1], [], []>} : vector<8x128xbf16>, vector<128x128xbf16>, vector<8x128xf32> -> vector<8x128xf32>
    %c0_32 = arith.constant 0 : index
    %c0_33 = arith.constant 0 : index
    %69 = vector.load %arg10[%c0_32, %c0_33] : memref<1x128xf32, #tpu.memory_space<vmem>>, vector<1x128xf32>
    %70 = vector.broadcast %69 : vector<1x128xf32> to vector<8x128xf32>
    %71 = arith.addf %68, %70 : vector<8x128xf32>
    %72 = arith.addf %71, %3 : vector<8x128xf32>
    %c0_34 = arith.constant 0 : index
    %c0_35 = arith.constant 0 : index
    %73 = vector.load %arg11[%c0_34, %c0_35] : memref<1x128xf32, #tpu.memory_space<vmem>>, vector<1x128xf32>
    %c0_36 = arith.constant 0 : index
    %c0_37 = arith.constant 0 : index
    %74 = vector.load %arg12[%c0_36, %c0_37] : memref<1x128xf32, #tpu.memory_space<vmem>>, vector<1x128xf32>
    %cst_38 = arith.constant dense<0.000000e+00> : vector<8xf32>
    %75 = vector.multi_reduction <add>, %72, %cst_38 [1] : vector<8x128xf32> to vector<8xf32>
    %76 = vector.shape_cast %75 : vector<8xf32> to vector<8x1xf32>
    %cst_39 = arith.constant 1.280000e+02 : f32
    %77 = vector.broadcast %cst_39 : f32 to vector<8x1xf32>
    %78 = arith.divf %76, %77 : vector<8x1xf32>
    %79 = vector.broadcast %78 : vector<8x1xf32> to vector<8x128xf32>
    %80 = arith.subf %72, %79 : vector<8x128xf32>
    %81 = arith.mulf %80, %80 : vector<8x128xf32>
    %cst_40 = arith.constant dense<0.000000e+00> : vector<8xf32>
    %82 = vector.multi_reduction <add>, %81, %cst_40 [1] : vector<8x128xf32> to vector<8xf32>
    %83 = vector.shape_cast %82 : vector<8xf32> to vector<8x1xf32>
    %cst_41 = arith.constant 1.280000e+02 : f32
    %84 = vector.broadcast %cst_41 : f32 to vector<8x1xf32>
    %85 = arith.divf %83, %84 : vector<8x1xf32>
    %86 = vector.broadcast %78 : vector<8x1xf32> to vector<8x128xf32>
    %87 = arith.subf %72, %86 : vector<8x128xf32>
    %cst_42 = arith.constant 9.99999974E-6 : f32
    %88 = vector.broadcast %cst_42 : f32 to vector<8x1xf32>
    %89 = arith.addf %85, %88 : vector<8x1xf32>
    %90 = math.rsqrt %89 : vector<8x1xf32>
    %91 = vector.broadcast %90 : vector<8x1xf32> to vector<8x128xf32>
    %92 = arith.mulf %87, %91 : vector<8x128xf32>
    %93 = vector.broadcast %73 : vector<1x128xf32> to vector<8x128xf32>
    %94 = arith.mulf %92, %93 : vector<8x128xf32>
    %95 = vector.broadcast %74 : vector<1x128xf32> to vector<8x128xf32>
    %96 = arith.addf %94, %95 : vector<8x128xf32>
    %c0_43 = arith.constant 0 : index
    %c0_44 = arith.constant 0 : index
    %97 = vector.load %arg13[%c0_43, %c0_44] : memref<128x128xbf16, #tpu.memory_space<vmem>>, vector<128x128xbf16>
    %98 = arith.truncf %96 : vector<8x128xf32> to vector<8x128xbf16>
    %cst_45 = arith.constant dense<0.000000e+00> : vector<8x128xf32>
    %99 = tpu.matmul %98, %97, %cst_45 {dimension_numbers = #tpu.dot_dimension_numbers<[1], [0], [0], [1], [0, 0, 1, 1], [], []>} : vector<8x128xbf16>, vector<128x128xbf16>, vector<8x128xf32> -> vector<8x128xf32>
    %c0_46 = arith.constant 0 : index
    %c0_47 = arith.constant 0 : index
    %100 = vector.load %arg14[%c0_46, %c0_47] : memref<1x128xf32, #tpu.memory_space<vmem>>, vector<1x128xf32>
    %101 = vector.broadcast %100 : vector<1x128xf32> to vector<8x128xf32>
    %102 = arith.addf %99, %101 : vector<8x128xf32>
    %cst_48 = arith.constant 5.000000e-01 : f32
    %103 = vector.broadcast %cst_48 : f32 to vector<8x128xf32>
    %104 = arith.mulf %103, %102 : vector<8x128xf32>
    %cst_49 = arith.constant 2.000000e+00 : f32
    %105 = math.sqrt %cst_49 : f32
    %106 = vector.broadcast %105 : f32 to vector<8x128xf32>
    %107 = arith.divf %102, %106 : vector<8x128xf32>
    %108 = math.erf %107 : vector<8x128xf32>
    %cst_50 = arith.constant 1.000000e+00 : f32
    %109 = vector.broadcast %cst_50 : f32 to vector<8x128xf32>
    %110 = arith.addf %109, %108 : vector<8x128xf32>
    %111 = arith.mulf %104, %110 : vector<8x128xf32>
    %c0_51 = arith.constant 0 : index
    %c0_52 = arith.constant 0 : index
    %112 = vector.load %arg15[%c0_51, %c0_52] : memref<128x128xbf16, #tpu.memory_space<vmem>>, vector<128x128xbf16>
    %113 = arith.truncf %111 : vector<8x128xf32> to vector<8x128xbf16>
    %cst_53 = arith.constant dense<0.000000e+00> : vector<8x128xf32>
    %114 = tpu.matmul %113, %112, %cst_53 {dimension_numbers = #tpu.dot_dimension_numbers<[1], [0], [0], [1], [0, 0, 1, 1], [], []>} : vector<8x128xbf16>, vector<128x128xbf16>, vector<8x128xf32> -> vector<8x128xf32>
    %c0_54 = arith.constant 0 : index
    %c0_55 = arith.constant 0 : index
    %115 = vector.load %arg16[%c0_54, %c0_55] : memref<1x128xf32, #tpu.memory_space<vmem>>, vector<1x128xf32>
    %116 = vector.broadcast %115 : vector<1x128xf32> to vector<8x128xf32>
    %117 = arith.addf %114, %116 : vector<8x128xf32>
    %118 = arith.addf %117, %72 : vector<8x128xf32>
    %c0_56 = arith.constant 0 : index
    %c0_57 = arith.constant 0 : index
    %119 = vector.load %arg17[%c0_56, %c0_57] : memref<1x128xf32, #tpu.memory_space<vmem>>, vector<1x128xf32>
    %c0_58 = arith.constant 0 : index
    %c0_59 = arith.constant 0 : index
    %120 = vector.load %arg18[%c0_58, %c0_59] : memref<1x128xf32, #tpu.memory_space<vmem>>, vector<1x128xf32>
    %cst_60 = arith.constant dense<0.000000e+00> : vector<8xf32>
    %121 = vector.multi_reduction <add>, %118, %cst_60 [1] : vector<8x128xf32> to vector<8xf32>
    %122 = vector.shape_cast %121 : vector<8xf32> to vector<8x1xf32>
    %cst_61 = arith.constant 1.280000e+02 : f32
    %123 = vector.broadcast %cst_61 : f32 to vector<8x1xf32>
    %124 = arith.divf %122, %123 : vector<8x1xf32>
    %125 = vector.broadcast %124 : vector<8x1xf32> to vector<8x128xf32>
    %126 = arith.subf %118, %125 : vector<8x128xf32>
    %127 = arith.mulf %126, %126 : vector<8x128xf32>
    %cst_62 = arith.constant dense<0.000000e+00> : vector<8xf32>
    %128 = vector.multi_reduction <add>, %127, %cst_62 [1] : vector<8x128xf32> to vector<8xf32>
    %129 = vector.shape_cast %128 : vector<8xf32> to vector<8x1xf32>
    %cst_63 = arith.constant 1.280000e+02 : f32
    %130 = vector.broadcast %cst_63 : f32 to vector<8x1xf32>
    %131 = arith.divf %129, %130 : vector<8x1xf32>
    %132 = vector.broadcast %124 : vector<8x1xf32> to vector<8x128xf32>
    %133 = arith.subf %118, %132 : vector<8x128xf32>
    %cst_64 = arith.constant 9.99999974E-6 : f32
    %134 = vector.broadcast %cst_64 : f32 to vector<8x1xf32>
    %135 = arith.addf %131, %134 : vector<8x1xf32>
    %136 = math.rsqrt %135 : vector<8x1xf32>
    %137 = vector.broadcast %136 : vector<8x1xf32> to vector<8x128xf32>
    %138 = arith.mulf %133, %137 : vector<8x128xf32>
    %139 = vector.broadcast %119 : vector<1x128xf32> to vector<8x128xf32>
    %140 = arith.mulf %138, %139 : vector<8x128xf32>
    %141 = vector.broadcast %120 : vector<1x128xf32> to vector<8x128xf32>
    %142 = arith.addf %140, %141 : vector<8x128xf32>
    %143 = tpu.iota {dimensions = array<i32: 0>} : vector<8x1xi32>
    %144 = vector.broadcast %1 : i32 to vector<8x1xi32>
    %145 = arith.cmpi eq, %143, %144 : vector<8x1xi32>
    %146 = vector.shape_cast %145 : vector<8x1xi1> to vector<8x1xi1>
    %147 = vector.broadcast %146 : vector<8x1xi1> to vector<8x128xi1>
    %148 = arith.select %147, %142, %3 : vector<8x128xi1>, vector<8x128xf32>
    %c0_65 = arith.constant 0 : index
    %c0_66 = arith.constant 0 : index
    %c0_67 = arith.constant 0 : index
    %149 = vector.load %arg19[%c0_65, %c0_66, %c0_67] : memref<1x8x128xf32, #tpu.memory_space<vmem>>, vector<1x8x128xf32>
    %150 = vector.shape_cast %149 : vector<1x8x128xf32> to vector<8x128xf32>
    %151 = vector.shape_cast %148 : vector<8x128xf32> to vector<1x8x128xf32>
    tpu.vector_store %arg19[%c0_65, %c0_66, %c0_67], %151 {strides = array<i32>} : memref<1x8x128xf32, #tpu.memory_space<vmem>>, vector<1x8x128xf32>,
    return
  }
  func.func @transform_0(%arg0: i32, %arg1: memref<3xi32, #tpu.memory_space<smem>>, %arg2: memref<3xi32, #tpu.memory_space<smem>>) -> (i32, i32, i32) {
    %0 = arith.index_cast %arg0 : i32 to index
    %1 = memref.load %arg1[%0] : memref<3xi32, #tpu.memory_space<smem>>
    %c0_i32 = arith.constant 0 : i32
    %c0_i32_0 = arith.constant 0 : i32
    return %arg0, %1, %c0_i32 : i32, i32, i32
  }
  func.func @transform_1(%arg0: i32, %arg1: memref<3xi32, #tpu.memory_space<smem>>, %arg2: memref<3xi32, #tpu.memory_space<smem>>) -> (i32, i32, i32) {
    %c0_i32 = arith.constant 0 : i32
    %c0_i32_0 = arith.constant 0 : i32
    %c0_i32_1 = arith.constant 0 : i32
    return %arg0, %c0_i32, %c0_i32_0 : i32, i32, i32
  }
  func.func @transform_2(%arg0: i32, %arg1: memref<3xi32, #tpu.memory_space<smem>>, %arg2: memref<3xi32, #tpu.memory_space<smem>>) -> (i32, i32) {
    %c0_i32 = arith.constant 0 : i32
    %c0_i32_0 = arith.constant 0 : i32
    %c0_i32_1 = arith.constant 0 : i32
    return %c0_i32, %c0_i32_0 : i32, i32
  }
  func.func @transform_3(%arg0: i32, %arg1: memref<3xi32, #tpu.memory_space<smem>>, %arg2: memref<3xi32, #tpu.memory_space<smem>>) -> (i32, i32) {
    %c0_i32 = arith.constant 0 : i32
    %c0_i32_0 = arith.constant 0 : i32
    %c0_i32_1 = arith.constant 0 : i32
    return %c0_i32, %c0_i32_0 : i32, i32
  }
  func.func @transform_4(%arg0: i32, %arg1: memref<3xi32, #tpu.memory_space<smem>>, %arg2: memref<3xi32, #tpu.memory_space<smem>>) -> (i32, i32) {
    %c0_i32 = arith.constant 0 : i32
    %c0_i32_0 = arith.constant 0 : i32
    %c0_i32_1 = arith.constant 0 : i32
    return %c0_i32, %c0_i32_0 : i32, i32
  }
  func.func @transform_5(%arg0: i32, %arg1: memref<3xi32, #tpu.memory_space<smem>>, %arg2: memref<3xi32, #tpu.memory_space<smem>>) -> (i32, i32) {
    %c0_i32 = arith.constant 0 : i32
    %c0_i32_0 = arith.constant 0 : i32
    %c0_i32_1 = arith.constant 0 : i32
    return %c0_i32, %c0_i32_0 : i32, i32
  }
  func.func @transform_6(%arg0: i32, %arg1: memref<3xi32, #tpu.memory_space<smem>>, %arg2: memref<3xi32, #tpu.memory_space<smem>>) -> (i32, i32) {
    %c0_i32 = arith.constant 0 : i32
    %c0_i32_0 = arith.constant 0 : i32
    %c0_i32_1 = arith.constant 0 : i32
    return %c0_i32, %c0_i32_0 : i32, i32
  }
  func.func @transform_7(%arg0: i32, %arg1: memref<3xi32, #tpu.memory_space<smem>>, %arg2: memref<3xi32, #tpu.memory_space<smem>>) -> (i32, i32) {
    %c0_i32 = arith.constant 0 : i32
    %c0_i32_0 = arith.constant 0 : i32
    %c0_i32_1 = arith.constant 0 : i32
    return %c0_i32, %c0_i32_0 : i32, i32
  }
  func.func @transform_8(%arg0: i32, %arg1: memref<3xi32, #tpu.memory_space<smem>>, %arg2: memref<3xi32, #tpu.memory_space<smem>>) -> (i32, i32) {
    %c0_i32 = arith.constant 0 : i32
    %c0_i32_0 = arith.constant 0 : i32
    %c0_i32_1 = arith.constant 0 : i32
    return %c0_i32, %c0_i32_0 : i32, i32
  }
  func.func @transform_9(%arg0: i32, %arg1: memref<3xi32, #tpu.memory_space<smem>>, %arg2: memref<3xi32, #tpu.memory_space<smem>>) -> (i32, i32) {
    %c0_i32 = arith.constant 0 : i32
    %c0_i32_0 = arith.constant 0 : i32
    %c0_i32_1 = arith.constant 0 : i32
    return %c0_i32, %c0_i32_0 : i32, i32
  }
  func.func @transform_10(%arg0: i32, %arg1: memref<3xi32, #tpu.memory_space<smem>>, %arg2: memref<3xi32, #tpu.memory_space<smem>>) -> (i32, i32) {
    %c0_i32 = arith.constant 0 : i32
    %c0_i32_0 = arith.constant 0 : i32
    %c0_i32_1 = arith.constant 0 : i32
    return %c0_i32, %c0_i32_0 : i32, i32
  }
  func.func @transform_11(%arg0: i32, %arg1: memref<3xi32, #tpu.memory_space<smem>>, %arg2: memref<3xi32, #tpu.memory_space<smem>>) -> (i32, i32) {
    %c0_i32 = arith.constant 0 : i32
    %c0_i32_0 = arith.constant 0 : i32
    %c0_i32_1 = arith.constant 0 : i32
    return %c0_i32, %c0_i32_0 : i32, i32
  }
  func.func @transform_12(%arg0: i32, %arg1: memref<3xi32, #tpu.memory_space<smem>>, %arg2: memref<3xi32, #tpu.memory_space<smem>>) -> (i32, i32) {
    %c0_i32 = arith.constant 0 : i32
    %c0_i32_0 = arith.constant 0 : i32
    %c0_i32_1 = arith.constant 0 : i32
    return %c0_i32, %c0_i32_0 : i32, i32
  }
  func.func @transform_13(%arg0: i32, %arg1: memref<3xi32, #tpu.memory_space<smem>>, %arg2: memref<3xi32, #tpu.memory_space<smem>>) -> (i32, i32) {
    %c0_i32 = arith.constant 0 : i32
    %c0_i32_0 = arith.constant 0 : i32
    %c0_i32_1 = arith.constant 0 : i32
    return %c0_i32, %c0_i32_0 : i32, i32
  }
  func.func @transform_14(%arg0: i32, %arg1: memref<3xi32, #tpu.memory_space<smem>>, %arg2: memref<3xi32, #tpu.memory_space<smem>>) -> (i32, i32) {
    %c0_i32 = arith.constant 0 : i32
    %c0_i32_0 = arith.constant 0 : i32
    %c0_i32_1 = arith.constant 0 : i32
    return %c0_i32, %c0_i32_0 : i32, i32
  }
  func.func @transform_15(%arg0: i32, %arg1: memref<3xi32, #tpu.memory_space<smem>>, %arg2: memref<3xi32, #tpu.memory_space<smem>>) -> (i32, i32) {
    %c0_i32 = arith.constant 0 : i32
    %c0_i32_0 = arith.constant 0 : i32
    %c0_i32_1 = arith.constant 0 : i32
    return %c0_i32, %c0_i32_0 : i32, i32
  }
  func.func @transform_16(%arg0: i32, %arg1: memref<3xi32, #tpu.memory_space<smem>>, %arg2: memref<3xi32, #tpu.memory_space<smem>>) -> (i32, i32, i32) {
    %0 = arith.index_cast %arg0 : i32 to index
    %1 = memref.load %arg1[%0] : memref<3xi32, #tpu.memory_space<smem>>
    %c0_i32 = arith.constant 0 : i32
    %c0_i32_0 = arith.constant 0 : i32
    return %arg0, %1, %c0_i32 : i32, i32, i32
  }
}

</mosaic_0001>

<bundles_post_ra>
// kernel: tpu_custom_call.1
= control target key start
LH: loop header
LB: loop body
LE: loop exit
PB: predicated region body
PF: predicated region fallthrough
CT: control target
= control target key end

     0   :  { %s2392_s0 = inlined_call_operand.vmem [shape: s32[3], index: 0, kind: input, shape index: {}]   ;;  %s2393_s2 = inlined_call_operand.hbm [shape: f32[3,77,128], index: 2, kind: input, shape index: {}, may-alias: {2,18}]   ;;  %s2394_s3 = inlined_call_operand.vmem [shape: f32[3,1,128], index: 3, kind: input, shape index: {}]   ;;  %s2395_s4 = inlined_call_operand.vmem [shape: f32[1,256], index: 4, kind: input, shape index: {}]   ;;  %s2396_s5 = inlined_call_operand.vmem [shape: f32[1,256], index: 5, kind: input, shape index: {}]   ;;  %s2397_s6 = inlined_call_operand.vmem [shape: bf16[256,128], index: 6, kind: input, shape index: {}]   ;;  %s2398_s7 = inlined_call_operand.vmem [shape: f32[1,128], index: 7, kind: input, shape index: {}]   ;;  %s2399_s8 = inlined_call_operand.vmem [shape: bf16[128,128], index: 8, kind: input, shape index: {}]   ;;  %s2400_s9 = inlined_call_operand.vmem [shape: f32[1,128], index: 9, kind: input, shape index: {}]   ;;  %s2401_s10 = inlined_call_operand.vmem [shape: f32[1,128], index: 10, kind: input, shape index: {}]   ;;  %s2402_s11 = inlined_call_operand.vmem [shape: f32[1,128], index: 11, kind: input, shape index: {}]   ;;  %s2403_s12 = inlined_call_operand.vmem [shape: bf16[128,128], index: 12, kind: input, shape index: {}]   ;;  %s2404_s13 = inlined_call_operand.vmem [shape: f32[1,128], index: 13, kind: input, shape index: {}]   ;;  %s2405_s14 = inlined_call_operand.vmem [shape: bf16[128,128], index: 14, kind: input, shape index: {}]   ;;  %s2406_s15 = inlined_call_operand.vmem [shape: f32[1,128], index: 15, kind: input, shape index: {}]   ;;  %s2407_s16 = inlined_call_operand.vmem [shape: f32[1,128], index: 16, kind: input, shape index: {}]   ;;  %s2408_s17 = inlined_call_operand.vmem [shape: f32[1,128], index: 17, kind: input, shape index: {}]   ;;  %s2409_s18 = inlined_call_operand.hbm [shape: f32[3,77,128], index: 18, kind: output, shape index: {}, may-alias: {2,18}]   ;;  %s2410_s1 = inlined_call_operand.vmem [shape: s32[3], index: 1, kind: input, shape index: {}]  }
   0x1   :  { %2421 = sst [smem:[#allocation22_spill]] %s2392_s0  ;;  %s27_s19 = sshll.u32 %s2410_s1, 4  ;;  %s28_s19 = int_to_ptr.vmem [resolvable:$true] %s27_s19 }
   0x2   :  { %2422 = sst [smem:[#allocation23_spill]] %s2393_s2  ;;  %s2431_s29 = sld [smem:[#allocation22_spill]] }
   0x3   :  { %2423 = sst [smem:[#allocation24_spill]] %s2394_s3 }
   0x4   :  { %2424 = sst [smem:[#allocation25_spill]] %s2395_s4 }
   0x5   :  { %2425 = sst [smem:[#allocation26_spill]] %s2402_s11 }
   0x6   :  { %2426 = sst [smem:[#allocation27_spill]] %s2404_s13 }
   0x7   :  { %2427 = sst [smem:[#allocation28_spill]] %s2406_s15 }
   0x8   :  { %2428 = sst [smem:[#allocation29_spill]] %s2407_s16  ;;  %s23_s13 = sshll.u32 %s2431_s29, 4  ;;  %s24_s13 = int_to_ptr.vmem [resolvable:$true] %s23_s13 }
   0x9   :  { %2429 = sst [smem:[#allocation30_spill]] %s2408_s17  ;;  %s1715_s2 = scalar_lea.vmem %s24_s13, 16 }
   0xa   :  { %2430 = sst [smem:[#allocation31_spill]] %s2409_s18  ;;  %p1716_p0 = scmp.ne.s32.totalorder %s24_s13, %s1715_s2 }
   0xb   :  { %p1720_p1 = scmp.lt.s32.totalorder %s24_s13, %s24_s13  ;;  %p1721_p2 = scmp.lt.s32.totalorder %s1715_s2, %s1715_s2 }
   0xd   :  { %p1722_p3 = por %p1721_p2, %p1720_p1 }
   0xf   :  { %p1723_p4 = pnand %p1722_p3, %p1716_p0 }
  0x11   :  { %1726 = shalt.err (!%p1723_p4)  }
  0x12   :  { %s1863_s20 = smov [#allocation3]   ;;  %s1727_s21 = scalar_lea.vmem %s28_s19, 16 }
  0x13   :  { %26 = dma.vmem_to_smem %s24_s13, 16, %s1863_s20, [#allocation2] }
  0x14   :  { %p1728_p5 = scmp.ne.s32.totalorder %s28_s19, %s1727_s21  ;;  %p1732_p6 = scmp.lt.s32.totalorder %s28_s19, %s28_s19 }
  0x15   :  { %p1733_p7 = scmp.lt.s32.totalorder %s1727_s21, %s1727_s21 }
  0x17   :  { %p1734_p8 = por %p1733_p7, %p1732_p6 }
  0x19   :  { %p1735_p9 = pnand %p1734_p8, %p1728_p5 }
  0x1b   :  { %1738 = shalt.err (!%p1735_p9)  }
  0x1c   :  { %s1864_s22 = smov [#allocation4]  }
  0x1d   :  { %30 = dma.vmem_to_smem %s28_s19, 16, %s1864_s22, [#allocation2] }
  0x1e   :  { %1825 = dma.done.wait [#allocation2], 32 }
  0x1f   :  { %1826 = vsyncadd [#allocation2], 4294967264 }
  0x20   :  { %32 = sfence }
  0x21   :  { %33 = vsyncpa [#allocation6], 0 }
  0x22   :  { %35 = vsyncpa [#allocation6 + $0x1], 0 }
  0x23   :  { %36 = vsyncpa [#allocation7], 0 }
  0x24   :  { %38 = vsyncpa [#allocation7 + $0x1], 0  ;;  %s1970_s1 = smov 0   ;;  %s1972_s3 = smov 0  }
  0x25   :  { %s1974_s13 = smov 0   ;;  %s1976_s23 = smov 0  }
  0x26   :  { %s1978_s24 = smov 0   ;;  %s1980_s25 = smov 0  }
  0x27   :  { %s1982_s26 = smov 0  }
  0x28 LB: > { %2432 = sst [smem:[#allocation15_spill]] %s1837_s1  ;;  %s2004_s27 = sadd.s32 4294967295, %s1861_s26   ;;  %s1861_s26 = sphi %s1982_s26, %s2458_s26   ;;  %s1857_s25 = sphi %s1980_s25, %s2462_s25   ;;  %s1853_s24 = sphi %s1978_s24, %s2466_s24   ;;  %s1849_s23 = sphi %s1976_s23, %s2465_s23   ;;  %s1845_s13 = sphi %s1974_s13, %s2460_s13   ;;  %s1841_s3 = sphi %s1972_s3, %s2464_s3   ;;  %s1837_s1 = sphi %s1970_s1, %s2463_s1  }
  0x29   : > { %2433 = sst [smem:[#allocation16_spill]] %s1845_s13  ;;  %s2007_s28 = sadd.s32 1, %s1861_s26  }
  0x2a   : > { %2434 = sst [smem:[#allocation17_spill]] %s1857_s25  ;;  %s1374_s30 = sadd.s32 4294967294, %s1861_s26  }
  0x2b   : > { %2435 = sst [smem:[#allocation18_spill]] %s2007_s28  ;;  %s50_s19 = ssub.s32 %s1861_s26, %s2007_s28 }
  0x2c   : > { %s48_s29 = sld [smem:[#allocation3 + %s1861_s26]]  ;;  %s55_s2 = sadd.s32 1, %s1857_s25 }
  0x2d   : > { %s49_s0 = sld [smem:[#allocation3 + %s2007_s28]]  ;;  %p62_p10 = scmp.ne.s32.totalorder %s1857_s25, %s1853_s24 }
  0x2e   : > { %p68_p11 = scmp.ne.s32.totalorder %s1853_s24, %s1849_s23  ;;  %p69_p12 = scmp.eq.s32.totalorder %s2004_s27, 0 }
  0x2f   : > { %s398_s20 = sld [smem:[#allocation3 + %s1861_s26]]  ;;  %p63_p13 = scmp.eq.s32.totalorder %s1861_s26, 0 }
  0x30   : > { %s399_s21 = sld [smem:[#allocation3 + %s2007_s28]]  ;;  %p2022_p0 = por %p69_p12, %p68_p11 }
  0x31   : > { %s405_s18 = sadd.s32 1, %s1845_s13  ;;  %p415_p1 = scmp.ne.s32.totalorder %s1845_s13, %s1841_s3 }
  0x32   : > { %s2436_s22 = scalar_select %p2022_p0, 1, 0 }
  0x33   : > { %s51_s17 = ssub.s32 %s48_s29, %s49_s0  ;;  %p416_p2 = scmp.eq.s32.totalorder %s2004_s27, 2 }
  0x34   : > { %s52_s16 = sor.u32 %s51_s17, %s50_s19  ;;  %p421_p4 = scmp.ne.s32.totalorder %s1841_s3, %s1837_s1 }
  0x35   : > { %p53_p3 = scmp.eq.s32.totalorder %s52_s16, 0  ;;  %p2032_p5 = por %p416_p2, %p415_p1 }
  0x36   : > { %p422_p6 = scmp.eq.s32.totalorder %s1374_s30, 2  ;;  %s401_s15 = ssub.s32 %s398_s20, %s399_s21 }
  0x37   : > { %s2437_s23 = scalar_select %p2032_p5, 1, 0 }
  0x38   : > { %s2037_s28 = scalar_select %p53_p3, %s1857_s25, %s55_s2  }
  0x39   : > { %p2039_p7 = por %p422_p6, %p421_p4  ;;  %s402_s17 = sor.u32 %s401_s15, %s50_s19 }
  0x3a   : > { %2438 = sst [smem:[#allocation19_spill]] %s2037_s28  ;;  %p64_p8 = por %p63_p13, %p62_p10 }
  0x3b   : > { %s2439_s11 = scalar_select %p2039_p7, 1, 0 }
  0x3c   : > { %p403_p9 = scmp.eq.s32.totalorder %s402_s17, 0  ;;  %p1603_p11 = scmp.lt.s32.totalorder %s1861_s26, 3 }
  0x3d   : > { %2440 = sst [smem:[#allocation20_spill]] %s2439_s11  ;;  %s484_s16 = sand.u32 1, %s1857_s25  }
  0x3e   : > { %s2051_s29 = scalar_select %p403_p9, %s1845_s13, %s405_s18  }
  0x3f   : > { %s1377_s30 = sshll.u32 %s484_s16, 3  ;;  %p2053_p12 = pnand %p1603_p11, %p64_p8 }
  0x40   : > { %2441 = sst [smem:[#allocation21_spill]] %s2051_s29  ;;  %p1379_p1 = scmp.ge.s32.totalorder %s1861_s26, 1 }
  0x41   : > { %s1585_s2 = scalar_select %p64_p8, [#allocation3], [#allocation9] }
  0x42   : > { %s1586_s20 = scalar_select %p64_p8, %s1861_s26, 0 }
  0x43   : > { %s2468_s2 = smov (!%p1603_p11, %s1585_s2), [#allocation11]  ;;  %p509_p2 = scmp.lt.s32.totalorder %s1861_s26, 4 }
  0x44   : > { %s2470_s20 = smov (!%p1603_p11, %s1586_s20), 0  ;;  %s1583_s19 = smul.u32 10, %s1861_s26 }
  0x45   : > { %s489_s15 = sld [smem:[%s2468_s2 + %s2470_s20]]  ;;  %s488_s21 = scalar_lea.vmem [#allocation5], %s1377_s30 }
  0x46   : > { %s498_s17 = sshll.u32 %s488_s21, 4  ;;  %p2061_p10 = pnand %p1379_p1, %p509_p2  ;;  %s2065_s17 = int_to_ptr.vmem [resolvable:$true] %s498_s17 }
  0x47   : > { %s2444_s11 = sld [smem:[#allocation23_spill]]  ;;  %s485_s2 = scalar_lea.sflag [#allocation6], %s484_s16 }
  0x48   : > { %p1741_p3 = pneg %p2053_p12 }
  0x4b   : > { %s494_s28 = sadd.s32 %s1583_s19, %s489_s15 }
  0x4c   : > { %s1378_s25 = sshll.u32 %s494_s28, 7 }
  0x4d   : > { %s2070_s1 = scalar_lea.hbm %s2444_s11, %s1378_s25  ;;  %s1744_s15 = scalar_lea.hbm %s2444_s11, 3840 }
  0x4e   : > { %s1739_s30 = scalar_lea.hbm %s2070_s1, 128  ;;  %p1745_p8 = scmp.lt.u32.totalorder %s2070_s1, %s2444_s11 }
  0x4f   : > { %p1740_p13 = scmp.ne.s32.totalorder %s2070_s1, %s1739_s30  ;;  %p1746_p9 = scmp.lt.u32.totalorder %s1744_s15, %s1739_s30 }
  0x50   : > { %p1748_p1 = scmp.lt.u32.totalorder %s1739_s30, %s2070_s1 }
  0x51   : > { %p1742_p4 = pnand %p1741_p3, %p1740_p13  ;;  %p1747_p11 = por %p1746_p9, %p1745_p8 }
  0x53   : > { %p1743_p6 = pneg %p1742_p4  ;;  %p1749_p2 = por %p1748_p1, %p1747_p11 }
  0x55   : > { %p1750_p7 = pnand %p1749_p2, %p1743_p6 }
  0x57   : > { %1753 = shalt.err (!%p1750_p7)
}
  0x58   : > { %s1754_s16 = scalar_lea.vmem %s2065_s17, 128  ;;  %s1865_s29 = smov [#allocation5]  }
  0x59   : > { %p1755_p13 = scmp.ne.s32.totalorder %s2065_s17, %s1754_s16  ;;  %s1759_s19 = sshll.u32 %s1865_s29, 4  ;;  %s1760_s19 = int_to_ptr.vmem [resolvable:$false] %s1759_s19 }
  0x5a   : > { %s1761_s21 = scalar_lea.vmem %s1760_s19, 256  ;;  %p1762_p0 = scmp.lt.s32.totalorder %s2065_s17, %s1760_s19 }
  0x5b   : > { %p1757_p4 = pnand %p1755_p13, %p1741_p3  ;;  %p1763_p8 = scmp.lt.s32.totalorder %s1761_s21, %s1754_s16 }
  0x5d   : > { %p1758_p5 = pneg %p1757_p4  ;;  %p1764_p9 = por %p1763_p8, %p1762_p0 }
  0x5f   : > { %p1765_p11 = pnand %p1764_p9, %p1758_p5 }
  0x61   : > { %1768 = shalt.err (!%p1765_p11)
}
  0x62   : > { %1598 = dma.hbm_to_vmem [thread:$0]  (!%p2053_p12), %s2070_s1, 128, %s2065_s17, %s485_s2  }
  0x63   : > { %513 = sbr.rel (%p2061_p10) target bundleno = 1980 (0x7bc), region = 84  ;;  %s515_s30 = sand.u32 (!%p2061_p10), 1, %s1853_s24  }
  0x64   : > { %s1380_s20 = sshll.u32 (!%p2061_p10), %s515_s30, 3  ;;  %s516_s28 = scalar_lea.sflag (!%p2061_p10), [#allocation6], %s515_s30 }
  0x65   : > { %s519_s15 = scalar_lea.vmem (!%p2061_p10), [#allocation5], %s1380_s20  ;;  %p2445_p7 = scmp.ne.s32.totalorder (!%p2061_p10), %s2436_s22, 0 }
  0x6a   : > { %1828 = dma.done.wait (%p2445_p7), %s516_s28, 128  }
  0x6b   : > { %1830 = vsyncadd (%p2445_p7), %s516_s28, 4294967168  ;;  %p572_p0 = scmp.lt.s32.totalorder %s2004_s27, 2  ;;  %s2446_s17 = sld [smem:[#allocation24_spill]]  ;;  %vm582_vm0 = vcmask 1040384   ;;  %v2109_v2 = vld [vmem:[%s519_s15] sm:$0xff]  ;;  %v1866_v5 = vmov 0.0   ;;  %v586_v6 = vlaneseq }
  0x6c   : > { %v1665_v3 = vld [vmem:[%s2397_s6 + $0x40] sm:$0xff]   ;;  %1483 = vmatprep.subr.bf16.mxu0 %v1866_v5  ;;  %1503 = vmatprep.subr.bf16.mxu1 %v1866_v5  ;;  %v1667_v19 = vld [vmem:[%s2397_s6 + $0x48] sm:$0xff]   ;;  %v1669_v21 = vld [vmem:[%s2397_s6 + $0x50] sm:$0xff]   ;;  %vm1867_vm1 = vmmov 0   ;;  %s2447_s4 = sld [smem:[#allocation25_spill]]  ;;  %s2448_s21 = sld [smem:[#allocation26_spill]] }
  0x6d   : > { %s573_s0 = scalar_select %p572_p0, %s2004_s27, 2  ;;  %v1666_v4 = vld [vmem:[%s2397_s6] sm:$0xff]   ;;  %1484 = vmatpush3.bf16.msra.mxu0 %v1665_v3  ;;  %v2122_v7 = vshrl.u32 %v586_v6, 7  ;;  %v1668_v20 = vld [vmem:[%s2397_s6 + $0x8] sm:$0xff]   ;;  %v1670_v22 = vld [vmem:[%s2397_s6 + $0x10] sm:$0xff]   ;;  %1499 = vmatprep.mubr.msk.bf16.mxu0 %vm1867_vm1, %v1866_v5 }
  0x6e   : > { %1504 = vmatpush3.bf16.msra.mxu1 %v1666_v4  ;;  %1485 = vmatprep.subr.bf16.mxu0 %v1866_v5  ;;  %v1671_v23 = vld [vmem:[%s2397_s6 + $0x58] sm:$0xff]   ;;  %v1673_v25 = vld [vmem:[%s2397_s6 + $0x60] sm:$0xff]   ;;  %v1675_v27 = vld [vmem:[%s2397_s6 + $0x68] sm:$0xff]   ;;  %s2449_s16 = sld [smem:[#allocation27_spill]]  ;;  %p2451_p5 = scmp.ne.s32.totalorder %s2437_s23, 0 }
  0x6f   : > { %1505 = vmatprep.subr.bf16.mxu1 %v1866_v5  ;;  %v588_v8 = vsub.s32 0, %v2122_v7  ;;  %v1672_v24 = vld [vmem:[%s2397_s6 + $0x18] sm:$0xff]   ;;  %v1674_v26 = vld [vmem:[%s2397_s6 + $0x20] sm:$0xff]   ;;  %1519 = vmatprep.mubr.msk.bf16.mxu1 %vm1867_vm1, %v1866_v5  ;;  %v1676_v28 = vld [vmem:[%s2397_s6 + $0x28] sm:$0xff]   ;;  %s577_s15 = sld [smem:[#allocation4 + %s2004_s27]]  ;;  %s1584_s13 = smul.u32 10, %s2004_s27 }
  0x70   : > { %v1677_v29 = vld [vmem:[%s2397_s6 + $0x70] sm:$0xff]   ;;  %v1679_v31 = vld [vmem:[%s2397_s6 + $0x78] sm:$0xff]   ;;  %v1385_v43 = vld [vmem:[%s2396_s5 + $0x1] ss:$0 sm:$0xff]  ;;  %s1589_s30 = scalar_select %p2451_p5, [#allocation3], [#allocation10] }
  0x71   : > { %s574_s18 = scalar_lea.vmem %s2446_s17, %s573_s0  ;;  %1486 = vmatpush3.bf16.msra.mxu0 %v1667_v19  ;;  %v1678_v30 = vld [vmem:[%s2397_s6 + $0x30] sm:$0xff]   ;;  %v1680_v32 = vld [vmem:[%s2397_s6 + $0x38] sm:$0xff]   ;;  %v1383_v44 = vld [vmem:[%s2396_s5] ss:$0 sm:$0xff]  ;;  %s568_s0 = sand.u32 1, %s1841_s3  }
  0x72   : > { %v579_v0 = vld [vmem:[%s574_s18] sm:$0x1]  ;;  %1506 = vmatpush3.bf16.msra.mxu1 %v1668_v20  ;;  %1487 = vmatprep.subr.bf16.mxu0 %v1866_v5  ;;  %v1384_v39 = vld [vmem:[%s2447_s4 + $0x1] ss:$0 sm:$0xff]  ;;  %v1682_v52 = vld [vmem:[%s2399_s8 + $0x8] sm:$0xff]   ;;  %s1590_s20 = scalar_select %p2451_p5, %s2004_s27, 0 }
  0x73   : > { %v583_v1 = vsel %vm582_vm0, %v579_v0, 0.0  ;;  %v597_v13 = vrot.slane %v579_v0, %v588_v8  ;;  %1507 = vmatprep.subr.bf16.mxu1 %v1866_v5  ;;  %v1382_v40 = vld [vmem:[%s2447_s4] ss:$0 sm:$0xff]  ;;  %v1683_v53 = vld [vmem:[%s2399_s8 + $0x10] sm:$0xff]   ;;  %v1684_v54 = vld [vmem:[%s2399_s8 + $0x18] sm:$0xff]   ;;  %s1381_s1 = sshll.u32 %s568_s0, 3 }
  0x74   : > { %584 = vadd.xlane.f32.xlu0 %v583_v1  ;;  %v1681_v49 = vld [vmem:[%s2399_s8] sm:$0xff]   ;;  %v1686_v56 = vld [vmem:[%s2399_s8 + $0x28] sm:$0xff]   ;;  %v1687_v57 = vld [vmem:[%s2399_s8 + $0x30] sm:$0xff]   ;;  %s1282_s28 = sld [smem:[%s1589_s30 + %s1590_s20]] }
  0x75   : > { %1488 = vmatpush3.bf16.msra.mxu0 %v1669_v21  ;;  %v1685_v55 = vld [vmem:[%s2399_s8 + $0x20] sm:$0xff]   ;;  %v1688_v58 = vld [vmem:[%s2399_s8 + $0x38] sm:$0xff]   ;;  %s2452_s2 = sld [smem:[#allocation29_spill]]  ;;  %s2453_s29 = sld [smem:[#allocation30_spill]] }
  0x76   : > { %1508 = vmatpush3.bf16.msra.mxu1 %v1670_v22  ;;  %1489 = vmatprep.subr.bf16.mxu0 %v1866_v5  ;;  %v1402_v61 = vld [vmem:[%s2398_s7] ss:$0 sm:$0xff]  ;;  %s2454_s4 = sld [smem:[#allocation31_spill]] }
  0x77   : > { %1509 = vmatprep.subr.bf16.mxu1 %v1866_v5  ;;  %v1689_v22 = vld [vmem:[%s2403_s12] sm:$0xff]  }
  0x78   : > { %580 = vadd.xlane.f32.xlu0 %v2109_v2 }
  0x79   : > { %1490 = vmatpush3.bf16.msra.mxu0 %v1671_v23  ;;  %v1690_v23 = vld [vmem:[%s2403_s12 + $0x8] sm:$0xff]  }
  0x7a   : > { %1510 = vmatpush3.bf16.msra.mxu1 %v1672_v24  ;;  %1491 = vmatprep.subr.bf16.mxu0 %v1866_v5  ;;  %s1287_s25 = sadd.s32 %s1584_s13, %s1282_s28  ;;  %s1275_s28 = scalar_lea.sflag [#allocation7], %s568_s0 }
  0x7b   : > { %1511 = vmatprep.subr.bf16.mxu1 %v1866_v5  ;;  %s1435_s19 = sshll.u32 %s1287_s25, 7  ;;  %s1868_s13 = smov [#allocation8]  }
  0x7c   : > { %s2340_s17 = scalar_lea.hbm %s2454_s4, %s1435_s19 }
  0x7d   : > { %1492 = vmatpush3.bf16.msra.mxu0 %v1673_v25 }
  0x7e   : > { %1512 = vmatpush3.bf16.msra.mxu1 %v1674_v26  ;;  %1493 = vmatprep.subr.bf16.mxu0 %v1866_v5 }
  0x7f   : > { %1513 = vmatprep.subr.bf16.mxu1 %v1866_v5 }
  0x81   : > { %1494 = vmatpush3.bf16.msra.mxu0 %v1675_v27 }
  0x82   : > { %1514 = vmatpush3.bf16.msra.mxu1 %v1676_v28  ;;  %1495 = vmatprep.subr.bf16.mxu0 %v1866_v5  ;;  %v1691_v28 = vld [vmem:[%s2403_s12 + $0x10] sm:$0xff]  }
  0x83   : > { %1515 = vmatprep.subr.bf16.mxu1 %v1866_v5 }
  0x85   : > { %1496 = vmatpush3.bf16.msra.mxu0 %v1677_v29  ;;  %v1692_v29 = vld [vmem:[%s2403_s12 + $0x18] sm:$0xff]  }
  0x86   : > { %1516 = vmatpush3.bf16.msra.mxu1 %v1678_v30  ;;  %1497 = vmatprep.subr.bf16.mxu0 %v1866_v5  ;;  %v1693_v30 = vld [vmem:[%s2403_s12 + $0x20] sm:$0xff]  }
  0x87   : > { %1517 = vmatprep.subr.bf16.mxu1 %v1866_v5 }
  0x89   : > { %1498 = vmatpush3.bf16.msra.mxu0 %v1679_v31  ;;  %v1694_v31 = vld [vmem:[%s2403_s12 + $0x28] sm:$0xff]  }
  0x8a   : > { %1518 = vmatpush3.bf16.msra.mxu1 %v1680_v32  ;;  %1523 = vmatprep.subr.bf16.mxu0 %v1866_v5  ;;  %v1695_v32 = vld [vmem:[%s2403_s12 + $0x30] sm:$0xff]  }
  0x8b   : > { %1543 = vmatprep.subr.bf16.mxu1 %v1866_v5 }
 0x101   : > { %v585_v9 = vpop.xlane.xlu0 %584 }
 0x102   : > { %v589_v10 = vrot.slane %v585_v9, %v588_v8 }
 0x105   : > { %v581_v11 = vpop.xlane.xlu0 %580 }
 0x106   : > { %v590_v12 = vadd.f32 %v589_v10, %v581_v11 }
 0x108   : > { %v591_v14 = vmul.f32 0.00390625, %v590_v12 }
 0x10a   : > { %v592_v15 = vsub.f32 %v2109_v2, %v591_v14  ;;  %v599_v16 = vsub.f32 %v597_v13, %v591_v14 }
 0x10c   : > { %v600_v17 = vmul.f32 %v592_v15, %v592_v15  ;;  %v603_v18 = vmul.f32 %v599_v16, %v599_v16 }
 0x10e   : > { %601 = vadd.xlane.f32.xlu1 %v600_v17 }
 0x112   : > { %604 = vadd.xlane.f32.xlu1 %v603_v18 }
 0x19b   : > { %v602_v33 = vpop.xlane.xlu1 %601 }
 0x19f   : > { %v605_v34 = vpop.xlane.xlu1 %604 }
 0x1a0   : > { %v606_v35 = vadd.f32 %v605_v34, %v602_v33  ;;  %v1696_v33 = vld [vmem:[%s2403_s12 + $0x38] sm:$0xff]   ;;  %v1697_v34 = vld [vmem:[%s2405_s14] sm:$0xff]  }
 0x1a2   : > { %v607_v36 = vmul.f32 0.00390625, %v606_v35  ;;  %v1698_v35 = vld [vmem:[%s2405_s14 + $0x8] sm:$0xff]  }
 0x1a4   : > { %v608_v37 = vadd.f32 1e-05, %v607_v36  ;;  %v1699_v36 = vld [vmem:[%s2405_s14 + $0x10] sm:$0xff]  }
 0x1a6   : > { %1705 = vrsqrt.f32 %v608_v37 }
 0x1b0   : > { %v1706_v38 = vpop.eup %1705 }
 0x1b1   : > { %v627_v41 = vmul.f32 %v1706_v38, %v599_v16  ;;  %v610_v42 = vmul.f32 %v1706_v38, %v592_v15  ;;  %v1403_v15 = vld [vmem:[%s2400_s9] ss:$0 sm:$0xff] }
 0x1b3   : > { %v635_v45 = vmul.f32 %v1384_v39, %v627_v41  ;;  %v618_v46 = vmul.f32 %v1382_v40, %v610_v42  ;;  %v1412_v41 = vld [vmem:[%s2401_s10] ss:$0 sm:$0xff] }
 0x1b5   : > { %v643_v47 = vadd.f32 %v1385_v43, %v635_v45  ;;  %v626_v48 = vadd.f32 %v1383_v44, %v618_v46  ;;  %v1413_v43 = vld [vmem:[%s2448_s21] ss:$0 sm:$0xff]  ;;  %s2450_s21 = sld [smem:[#allocation28_spill]] }
 0x1b7   : > { %v677_v50 = vpack.c.bf16 %v643_v47, %v643_v47  ;;  %v660_v51 = vpack.c.bf16 %v626_v48, %v626_v48  ;;  %v1700_v47 = vld [vmem:[%s2405_s14 + $0x18] sm:$0xff]   ;;  %v1701_v48 = vld [vmem:[%s2405_s14 + $0x20] sm:$0xff]  }
 0x1b9   : > { %1500 = vmatmul.mubr.bf16.vlgmr.msra.gmra.mrb[0].mxu0 %v677_v50  ;;  %1520 = vmatmul.mubr.bf16.vlgmr.msra.gmra.mrb[0].mxu1 %v660_v51  ;;  %v1703_v50 = vld [vmem:[%s2405_s14 + $0x30] sm:$0xff]   ;;  %v1704_v51 = vld [vmem:[%s2405_s14 + $0x38] sm:$0xff]  }
 0x1ba   : > { %1524 = vmatpush3.bf16.msra.mxu0 %v1681_v49  ;;  %1539 = vmatprep.mubr.msk.bf16.mxu0 %vm1867_vm1, %v1866_v5  ;;  %v1702_v49 = vld [vmem:[%s2405_s14 + $0x28] sm:$0xff]  }
 0x1bb   : > { %1525 = vmatprep.subr.bf16.mxu0 %v1866_v5  ;;  %1559 = vmatprep.mubr.msk.bf16.mxu1 %vm1867_vm1, %v1866_v5 }
 0x1bc   : > { %1544 = vmatpush3.bf16.msra.mxu1 %v1689_v22 }
 0x1bd   : > { %1545 = vmatprep.subr.bf16.mxu1 %v1866_v5 }
 0x1be   : > { %1526 = vmatpush3.bf16.msra.mxu0 %v1682_v52  ;;  %v1414_v52 = vld [vmem:[%s2449_s16] ss:$0 sm:$0xff] }
 0x1bf   : > { %1527 = vmatprep.subr.bf16.mxu0 %v1866_v5 }
 0x1c0   : > { %1546 = vmatpush3.bf16.msra.mxu1 %v1690_v23 }
 0x1c1   : > { %1547 = vmatprep.subr.bf16.mxu1 %v1866_v5 }
 0x1c2   : > { %1528 = vmatpush3.bf16.msra.mxu0 %v1683_v53 }
 0x1c3   : > { %1529 = vmatprep.subr.bf16.mxu0 %v1866_v5 }
 0x1c4   : > { %1548 = vmatpush3.bf16.msra.mxu1 %v1691_v28 }
 0x1c5   : > { %1549 = vmatprep.subr.bf16.mxu1 %v1866_v5 }
 0x1c6   : > { %1530 = vmatpush3.bf16.msra.mxu0 %v1684_v54 }
 0x1c7   : > { %1531 = vmatprep.subr.bf16.mxu0 %v1866_v5 }
 0x1c8   : > { %1550 = vmatpush3.bf16.msra.mxu1 %v1692_v29 }
 0x1c9   : > { %1551 = vmatprep.subr.bf16.mxu1 %v1866_v5 }
 0x1ca   : > { %1532 = vmatpush3.bf16.msra.mxu0 %v1685_v55 }
 0x1cb   : > { %1533 = vmatprep.subr.bf16.mxu0 %v1866_v5 }
 0x1cc   : > { %1552 = vmatpush3.bf16.msra.mxu1 %v1693_v30 }
 0x1cd   : > { %1553 = vmatprep.subr.bf16.mxu1 %v1866_v5 }
 0x1ce   : > { %1534 = vmatpush3.bf16.msra.mxu0 %v1686_v56 }
 0x1cf   : > { %1535 = vmatprep.subr.bf16.mxu0 %v1866_v5 }
 0x1d0   : > { %1554 = vmatpush3.bf16.msra.mxu1 %v1694_v31 }
 0x1d1   : > { %1555 = vmatprep.subr.bf16.mxu1 %v1866_v5 }
 0x1d2   : > { %1536 = vmatpush3.bf16.msra.mxu0 %v1687_v57 }
 0x1d3   : > { %1537 = vmatprep.subr.bf16.mxu0 %v1866_v5 }
 0x1d4   : > { %1556 = vmatpush3.bf16.msra.mxu1 %v1695_v32 }
 0x1d5   : > { %1557 = vmatprep.subr.bf16.mxu1 %v1866_v5 }
 0x1d6   : > { %1538 = vmatpush3.bf16.msra.mxu0 %v1688_v58 }
 0x1d7   : > { %1563 = vmatprep.subr.bf16.mxu0 %v1866_v5 }
 0x1d8   : > { %1558 = vmatpush3.bf16.msra.mxu1 %v1696_v33 }
 0x28c   : > { %v760_v59 = vpop.f32.mrb[0].mxu0  ;;  %v848_v60 = vpop.f32.mrb[0].mxu1 }
 0x28d   : > { %v849_v62 = vadd.f32 %v848_v60, %v760_v59  ;;  %v1501_v63 = vpop.f32.mrb[1].mxu0  ;;  %v1521_v0 = vpop.f32.mrb[1].mxu1 }
 0x28e   : > { %v763_v1 = vpop.f32.mrb[2].mxu0  ;;  %v851_v3 = vpop.f32.mrb[2].mxu1  ;;  %v1423_v63 = vld [vmem:[%s2450_s21] ss:$0 sm:$0xff]  ;;  %s570_s21 = scalar_lea.vmem [#allocation8], %s1381_s1  ;;  %s1773_s1 = sshll.u32 %s1868_s13, 4  ;;  %s1774_s1 = int_to_ptr.vmem [resolvable:$false] %s1773_s1 }
 0x28f   : > { %v861_v4 = vadd.f32 %v1402_v61, %v849_v62  ;;  %v1502_v6 = vpop.f32.mrb[3].mxu0  ;;  %v1522_v8 = vpop.f32.mrb[3].mxu1  ;;  %s1291_s30 = sshll.u32 %s570_s21, 4  ;;  %s1775_s18 = scalar_lea.vmem %s1774_s1, 256  ;;  %s2342_s30 = int_to_ptr.vmem [resolvable:$true] %s1291_s30 }
 0x290   : > { %p1776_p6 = scmp.lt.s32.totalorder %s2342_s30, %s1774_s1 }
 0x291   : > { %v864_v9 = vmul.f32 0.70710677, %v861_v4  ;;  %v862_v11 = vmul.f32 0.5, %v861_v4 }
 0x293   : > { %1707 = verf.f32 %v864_v9 }
 0x29d   : > { %v1708_v10 = vpop.eup %1707 }
 0x29e   : > { %v866_v12 = vadd.f32 1.0, %v1708_v10 }
 0x2a0   : > { %v867_v13 = vmul.f32 %v866_v12, %v862_v11 }
 0x2a2   : > { %v884_v14 = vpack.c.bf16 %v867_v13, %v867_v13 }
 0x2a4   : > { %1540 = vmatmul.mubr.bf16.vlgmr.msra.gmra.mrb[4].mxu0 %v884_v14 }
 0x2a5   : > { %1579 = vmatprep.mubr.msk.bf16.mxu0 %vm1867_vm1, %v1866_v5  ;;  %1564 = vmatpush3.bf16.msra.mxu0 %v1697_v34 }
 0x2a6   : > { %1565 = vmatprep.subr.bf16.mxu0 %v1866_v5 }
 0x2a9   : > { %1566 = vmatpush3.bf16.msra.mxu0 %v1698_v35 }
 0x2aa   : > { %1567 = vmatprep.subr.bf16.mxu0 %v1866_v5 }
 0x2ad   : > { %1568 = vmatpush3.bf16.msra.mxu0 %v1699_v36 }
 0x2ae   : > { %1569 = vmatprep.subr.bf16.mxu0 %v1866_v5 }
 0x2b1   : > { %1570 = vmatpush3.bf16.msra.mxu0 %v1700_v47 }
 0x2b2   : > { %1571 = vmatprep.subr.bf16.mxu0 %v1866_v5 }
 0x2b5   : > { %1572 = vmatpush3.bf16.msra.mxu0 %v1701_v48 }
 0x2b6   : > { %1573 = vmatprep.subr.bf16.mxu0 %v1866_v5 }
 0x2b9   : > { %1574 = vmatpush3.bf16.msra.mxu0 %v1702_v49 }
 0x2ba   : > { %1575 = vmatprep.subr.bf16.mxu0 %v1866_v5 }
 0x2bd   : > { %1576 = vmatpush3.bf16.msra.mxu0 %v1703_v50 }
 0x2be   : > { %1577 = vmatprep.subr.bf16.mxu0 %v1866_v5 }
 0x2c1   : > { %1578 = vmatpush3.bf16.msra.mxu0 %v1704_v51 }
 0x377   : > { %v974_v16 = vpop.f32.mrb[4].mxu0 }
 0x378   : > { %v975_v17 = vadd.f32 %v1403_v15, %v974_v16  ;;  %v1541_v18 = vpop.f32.mrb[5].mxu0 }
 0x379   : > { %v977_v19 = vpop.f32.mrb[6].mxu0  ;;  %v1268_v18 = vstv %s577_s15  ;;  %s1769_s15 = scalar_lea.vmem %s2342_s30, 128 }
 0x37a   : > { %v2243_v20 = vadd.f32 %v975_v17, %v2109_v2  ;;  %v1542_v21 = vpop.f32.mrb[7].mxu0  ;;  %v1432_v17 = vld [vmem:[%s2452_s2] ss:$0 sm:$0xff]  ;;  %vm1269_vm2 = vcmp.eq.s32.totalorder %v2122_v7, %v1268_v18  ;;  %p1770_p12 = scmp.ne.s32.totalorder %s2342_s30, %s1769_s15  ;;  %p1777_p1 = scmp.lt.s32.totalorder %s1775_s18, %s1769_s15 }
 0x37c   : > { %983 = vadd.xlane.f32.xlu0 %v2243_v20  ;;  %p1771_p10 = pnand %p1770_p12, %p2451_p5  ;;  %p1778_p2 = por %p1777_p1, %p1776_p6 }
 0x37e   : > { %p1772_p3 = pneg %p1771_p10 }
 0x380   : > { %p1779_p13 = pnand %p1778_p2, %p1772_p3 }
 0x409   : > { %v984_v24 = vpop.xlane.xlu0 %983 }
 0x40a   : > { %v986_v25 = vmul.f32 0.0078125, %v984_v24 }
 0x40c   : > { %v987_v26 = vsub.f32 %v2243_v20, %v986_v25 }
 0x40e   : > { %v988_v27 = vmul.f32 %v987_v26, %v987_v26 }
 0x410   : > { %989 = vadd.xlane.f32.xlu1 %v988_v27 }
 0x49d   : > { %v990_v37 = vpop.xlane.xlu1 %989 }
 0x49e   : > { %v991_v38 = vmul.f32 0.0078125, %v990_v37 }
 0x4a0   : > { %v992_v39 = vadd.f32 1e-05, %v991_v38 }
 0x4a2   : > { %1709 = vrsqrt.f32 %v992_v39 }
 0x4ac   : > { %v1710_v40 = vpop.eup %1709 }
 0x4ad   : > { %v994_v42 = vmul.f32 %v1710_v40, %v987_v26 }
 0x4af   : > { %v1001_v44 = vmul.f32 %v1412_v41, %v994_v42 }
 0x4b1   : > { %v1008_v45 = vadd.f32 %v1413_v43, %v1001_v44 }
 0x4b3   : > { %v1025_v46 = vpack.c.bf16 %v1008_v45, %v1008_v45 }
 0x4b5   : > { %1560 = vmatmul.mubr.bf16.vlgmr.msra.gmra.mrb[4].mxu1 %v1025_v46 }
 0x588   : > { %v1115_v53 = vpop.f32.mrb[4].mxu1 }
 0x589   : > { %v1116_v54 = vadd.f32 %v1414_v52, %v1115_v53  ;;  %v1561_v55 = vpop.f32.mrb[5].mxu1 }
 0x58a   : > { %v1118_v56 = vpop.f32.mrb[6].mxu1 }
 0x58b   : > { %v1122_v57 = vmul.f32 0.70710677, %v1116_v54  ;;  %v1562_v58 = vpop.f32.mrb[7].mxu1  ;;  %v1121_v60 = vmul.f32 0.5, %v1116_v54 }
 0x58d   : > { %1711 = verf.f32 %v1122_v57 }
 0x597   : > { %v1712_v59 = vpop.eup %1711 }
 0x598   : > { %v1124_v61 = vadd.f32 1.0, %v1712_v59 }
 0x59a   : > { %v1125_v5 = vmul.f32 %v1124_v61, %v1121_v60 }
 0x59c   : > { %v1142_v62 = vpack.c.bf16 %v1125_v5, %v1125_v5 }
 0x59e   : > { %1580 = vmatmul.mubr.bf16.vlgmr.msra.gmra.mrb[8].mxu0 %v1142_v62 }
 0x671   : > { %v1232_v0 = vpop.f32.mrb[8].mxu0 }
 0x672   : > { %v1233_v1 = vadd.f32 %v1423_v63, %v1232_v0  ;;  %v1581_v3 = vpop.f32.mrb[9].mxu0 }
 0x673   : > { %v1235_v4 = vpop.f32.mrb[10].mxu0 }
 0x674   : > { %v1582_v6 = vpop.f32.mrb[11].mxu0  ;;  %v1238_v8 = vadd.f32 %v1233_v1, %v2243_v20  ;;  %v1433_v20 = vld [vmem:[%s2453_s29] ss:$0 sm:$0xff] }
 0x676   : > { %1241 = vadd.xlane.f32.xlu0 %v1238_v8 }
 0x703   : > { %v1242_v9 = vpop.xlane.xlu0 %1241 }
 0x704   : > { %v1243_v10 = vmul.f32 0.0078125, %v1242_v9 }
 0x706   : > { %v1244_v11 = vsub.f32 %v1238_v8, %v1243_v10 }
 0x708   : > { %v1245_v12 = vmul.f32 %v1244_v11, %v1244_v11 }
 0x70a   : > { %1246 = vadd.xlane.f32.xlu1 %v1245_v12 }
 0x797   : > { %v1247_v13 = vpop.xlane.xlu1 %1246 }
 0x798   : > { %v1248_v14 = vmul.f32 0.0078125, %v1247_v13 }
 0x79a   : > { %v1249_v15 = vadd.f32 1e-05, %v1248_v14 }
 0x79c   : > { %1713 = vrsqrt.f32 %v1249_v15 }
 0x7a6   : > { %v1714_v16 = vpop.eup %1713 }
 0x7a7   : > { %v1251_v19 = vmul.f32 %v1714_v16, %v1244_v11 }
 0x7a9   : > { %v1258_v21 = vmul.f32 %v1432_v17, %v1251_v19 }
 0x7ab   : > { %v1265_v22 = vadd.f32 %v1433_v20, %v1258_v21 }
 0x7ad   : > { %v1272_v23 = vsel %vm1269_vm2, %v1265_v22, %v2109_v2 }
 0x7ae   : > { %1273 = vst [vmem:[%s570_s21] sm:$0xff] %v1272_v23 }
 0x7af   : > { %1782 = shalt.err (!%p1779_p13)
}
 0x7b0   : > { %s1783_s0 = scalar_lea.hbm %s2340_s17, 128  ;;  %s1787_s22 = scalar_lea.hbm %s2454_s4, 3840 }
 0x7b1   : > { %p1784_p4 = scmp.ne.s32.totalorder %s2340_s17, %s1783_s0  ;;  %p1788_p11 = scmp.lt.u32.totalorder %s2340_s17, %s2454_s4 }
 0x7b2   : > { %p1789_p7 = scmp.lt.u32.totalorder %s1787_s22, %s1783_s0  ;;  %p1791_p12 = scmp.lt.u32.totalorder %s1783_s0, %s2340_s17 }
 0x7b3   : > { %p1785_p8 = pnand %p1784_p4, %p2451_p5 }
 0x7b4   : > { %p1790_p0 = por %p1789_p7, %p1788_p11 }
 0x7b5   : > { %p1786_p9 = pneg %p1785_p8 }
 0x7b6   : > { %p1792_p10 = por %p1791_p12, %p1790_p0 }
 0x7b8   : > { %p1793_p3 = pnand %p1792_p10, %p1786_p9 }
 0x7ba   : > { %1796 = shalt.err (!%p1793_p3)
}
 0x7bb   : > { %1591 = dma.vmem_to_hbm [thread:$0]  (%p2451_p5), %s2342_s30, 128, %s2340_s17, %s1275_s28  }
 0x7bc PF: > { %s2455_s19 = sld [smem:[#allocation15_spill]]  ;;  %s2456_s21 = sld [smem:[#allocation20_spill]] }
 0x7bd   : > { %p1604_p6 = scmp.ge.s32.totalorder %s1861_s26, 2 }
 0x7c2   : > { %s1303_s27 = sand.u32 1, %s2455_s19   ;;  %p2457_p1 = scmp.ne.s32.totalorder %s2456_s21, 0 }
 0x7c3   : > { %s1304_s20 = scalar_lea.sflag [#allocation7], %s1303_s27 }
 0x7c4   : > { %p1600_p2 = pnand %p1604_p6, %p2457_p1 }
 0x7c6   : > { %1832 = dma.done.wait (!%p1600_p2), %s1304_s20, 128  }
 0x7c7   : > { %1834 = vsyncadd (!%p1600_p2), %s1304_s20, 4294967168  ;;  %s2458_s26 = sld [smem:[#allocation18_spill]]  ;;  %s2459_s15 = sld [smem:[#allocation16_spill]] }
 0x7c8   : > { %s2460_s13 = sld [smem:[#allocation21_spill]]  ;;  %s2461_s18 = sld [smem:[#allocation17_spill]] }
 0x7c9   : > { %s2462_s25 = sld [smem:[#allocation19_spill]]  ;;  %s2463_s1 = smov %s1841_s3 }
 0x7ca   : > { %s2465_s23 = smov %s1853_s24 }
 0x7cd   : > { %p41_p5 = scmp.ge.s32.totalorder %s2458_s26, 5   ;;  %s2464_s3 = smov %s2459_s15 }
 0x7ce   : > { %s2466_s24 = smov %s2461_s18 }
 0x7cf   :  { %43 = sbr.rel (!%p41_p5) target bundleno = 40 (0x28), region = 132 }
 0x7d6   :  { %1309 = vsyncpa [#allocation6], 1 }
 0x7d7   :  { %1311 = vsyncpa [#allocation6 + $0x1], 1 }
 0x7d8   :  { %1312 = vsyncpa [#allocation7], 1 }
 0x7d9   :  { %1314 = vsyncpa [#allocation7 + $0x1], 1 }

</bundles_post_ra>
